<compile_context>
chip_gen: v7x
topology: tpu7x:2x2x1
jax: 0.10.0
libtpu: 0.0.40
codegen_flags: <defaults>
</compile_context>

<pallas_src>
import functools

import jax
import jax.numpy as jnp
from jax.experimental import pallas as pl
from jax.experimental.pallas import tpu as pltpu


def _stable_softplus(x):
    # softplus(x) = max(x, 0) + log1p(exp(-|x|))  (numerically stable)
    return jnp.maximum(x, 0.0) + jnp.log1p(jnp.exp(-jnp.abs(x)))


def _round_up(a, b):
    return ((a + b - 1) // b) * b


def _device_kind():
    try:
        return jax.devices()[0].device_kind.lower()
    except Exception:  # no devices visible at trace time -> be conservative
        return ""


def _is_pre_v6():
    # v5e and older have no bf16 VPU/EUP path; v6e/v7x do.
    kind = _device_kind()
    return any(tag in kind for tag in ("v2", "v3", "v4", "v5"))


def _lambda_kernel(x_ref, o_ref, *, function, compute_dtype):
    x = x_ref[...]
    if compute_dtype is not None:
        # Sub-32-bit floats on pre-v6 chips (or f32 outputs): run the map in
        # f32 on the VPU/EUP and cast back on store.
        x = x.astype(compute_dtype)
    o_ref[...] = function(x).astype(o_ref.dtype)


class LambdaLayer:
    """JAX/Pallas port of the PyTorch LambdaLayer: applies `function` to x."""

    _LANE_CANDIDATES = (4096, 2048, 1024, 512, 256, 128)
    _ROW_ALIGN = 32               # covers f32(8)/bf16(16)/int8(32) sublane packing

    def __init__(self, function, *, min_pallas_bytes=1 << 20):
        self.function = function
        # Tiny distribution-head activations are cheaper as a plain (XLA-fused)
        # jnp call than as a standalone HBM round trip through a Pallas kernel.
        # TODO(synk): in production, fuse this domain map into the epilogue of
        # the producing projection matmul kernel instead of running standalone.
        self.min_pallas_bytes = min_pallas_bytes

    # ------------------------------------------------------------------ #

    def _run_pallas(self, flat, n_main, fn, in_dtype, out_dtype):
        """Apply fn to a flat, 128-aligned prefix via a lane-dense 2-D slab."""
        pre_v6 = _is_pre_v6()

        # Widest lane width dividing n_main (prefer rows >= 8 for full vreg
        # sublane packing) -> reshape / inverse reshape are layout no-ops.
        lanes = None
        for cand in self._LANE_CANDIDATES:
            if n_main % cand == 0 and n_main // cand >= 8:
                lanes = cand
                break
        if lanes is None:
            for cand in self._LANE_CANDIDATES:
                if n_main % cand == 0:
                    lanes = cand
                    break
        rows = n_main // lanes
        slab = flat.reshape(rows, lanes)

        # Chip-gated compute dtype (see header).  Keep f32 compute whenever
        # the output dtype is f32, regardless of chip.
        is_small_float = jnp.issubdtype(in_dtype, jnp.floating) and in_dtype.itemsize < 4
        use_f32 = is_small_float and (pre_v6 or out_dtype.itemsize >= 4)
        compute_dtype = jnp.float32 if use_f32 else None

        # Block sizing: 2 MiB on v5e-class, 4 MiB on v6e/v7x; row count aligned
        # for any dtype packing; >= 4 grid steps when there is enough data so
        # both v7x TensorCores get >= 2 blocks each (real double-buffering).
        target_block_bytes = (2 << 20) if pre_v6 else (4 << 20)
        row_bytes = lanes * max(in_dtype.itemsize, out_dtype.itemsize)
        tile_rows = max(
            self._ROW_ALIGN,
            (target_block_bytes // row_bytes) // self._ROW_ALIGN * self._ROW_ALIGN,
        )
        if rows >= 4 * self._ROW_ALIGN:
            tile_rows = min(tile_rows, _round_up(pl.cdiv(rows, 4), self._ROW_ALIGN))
        elif rows >= 2 * self._ROW_ALIGN:
            tile_rows = min(tile_rows, _round_up(pl.cdiv(rows, 2), self._ROW_ALIGN))

        if rows <= tile_rows:
            grid = (1,)
            block = (rows, lanes)      # single block == full array (always legal)
        else:
            grid = (pl.cdiv(rows, tile_rows),)   # partial last block is masked
            block = (tile_rows, lanes)

        n_in_bufs = 2
        if grid[0] >= 3:
            # DMA-exposed pipeline (compute per tile is tiny) -> a 3rd input
            # buffer hides DMA latency jitter at negligible VMEM cost.
            n_in_bufs = 3
            in_spec = pl.BlockSpec(block, lambda i: (i, 0),
                                   pipeline_mode=pl.Buffered(3))
        else:
            in_spec = pl.BlockSpec(block, lambda i: (i, 0))
        # TODO(synk): sweep pl.Buffered on out_specs too (writeback is half the
        # HBM traffic); kept at the default 2-deep here.
        out_spec = pl.BlockSpec(block, lambda i: (i, 0))

        # Explicit scoped-VMEM budget: 3x-in + 2x-out blocks + margin for
        # Mosaic internal scratch; floor 32 MiB, cap 48 MiB (< v7x's 64 MiB).
        in_block_bytes = block[0] * block[1] * in_dtype.itemsize
        out_block_bytes = block[0] * block[1] * out_dtype.itemsize
        vmem_limit = n_in_bufs * in_block_bytes + 2 * out_block_bytes + (8 << 20)
        vmem_limit = min(max(vmem_limit, 32 << 20), 48 << 20)

        # Coarse advisory estimate (softplus-like: ~4 flops + 2 EUP / element);
        # only used by XLA's scheduler to overlap neighbouring ops.
        cost = pl.CostEstimate(
            flops=4 * n_main,
            transcendentals=2 * n_main,
            bytes_accessed=n_main * (in_dtype.itemsize + out_dtype.itemsize),
        )

        kernel = functools.partial(
            _lambda_kernel, function=fn, compute_dtype=compute_dtype
        )

        out_slab = pl.pallas_call(
            kernel,
            out_shape=jax.ShapeDtypeStruct((rows, lanes), out_dtype),
            grid_spec=pltpu.PrefetchScalarGridSpec(
                num_scalar_prefetch=0,
                grid=grid,
                in_specs=[in_spec],
                out_specs=out_spec,
            ),
            compiler_params=pltpu.CompilerParams(
                dimension_semantics=("parallel",),
                vmem_limit_bytes=vmem_limit,
            ),
            cost_estimate=cost,
        )(slab)
        return out_slab.reshape(-1)

    # ------------------------------------------------------------------ #

    def __call__(self, x, *args):
        if args:
            # TODO(synk): thread extra positional args through in_specs
            # (pl.no_block_spec / BlockSpec) if this path is ever used with
            # traced arrays; fall back to plain jnp so they are handled
            # correctly instead of being baked in as constants.
            return self.function(x, *args)
        fn = self.function

        n = x.size
        if n < 128 or n * x.dtype.itemsize < self.min_pallas_bytes:
            return fn(x)  # small-input fallback: avoid launch + stitch overhead

        orig_shape = x.shape
        in_dtype = x.dtype
        out_dtype = jax.eval_shape(fn, jax.ShapeDtypeStruct((1,), in_dtype)).dtype

        flat = jnp.ravel(x)
        if n % 128 == 0:
            out_flat = self._run_pallas(flat, n, fn, in_dtype, out_dtype)
        else:
            # n not a multiple of 128: Pallas runs on the 128-aligned prefix;
            # the <128-element tail is computed with plain jnp and stitched
            # back (no whole-array pad, and `fn` never sees fake zeros).
            n_main = (n // 128) * 128
            main_out = self._run_pallas(flat[:n_main], n_main, fn, in_dtype, out_dtype)
            tail_out = fn(flat[n_main:]).astype(out_dtype)
            out_flat = jnp.concatenate([main_out, tail_out])
        return out_flat.reshape(orig_shape)


if __name__ == "__main__":
    key = jax.random.PRNGKey(0)
    # Force the Pallas path even at demo sizes (default threshold would use
    # the plain-jnp fallback for tensors this small).
    layer = LambdaLayer(_stable_softplus, min_pallas_bytes=0)

    # 1) Conv-style NCHW activation feeding a distribution head.
    x = jax.random.normal(key, (2, 4, 16, 16), dtype=jnp.float32)
    y = jax.block_until_ready(layer(x))
    y_ref = _stable_softplus(x)
    assert y.shape == x.shape and y.dtype == x.dtype
    assert jnp.allclose(y, y_ref, atol=1e-6, rtol=1e-6)

    # 2) Awkward size: exercises the 128-aligned-prefix + jnp-tail path,
    #    multi-block grid, and a masked partial last block.
    x2 = jax.random.normal(jax.random.fold_in(key, 1), (4, 3, 129, 65), dtype=jnp.float32)
    y2 = jax.block_until_ready(layer(x2))
    assert y2.shape == x2.shape
    assert jnp.allclose(y2, _stable_softplus(x2), atol=1e-6, rtol=1e-6)

    # 3) bf16 input: bf16 compute on v6e/v7x, f32 compute on v5e-class chips;
    #    stored as bf16 either way.
    x3 = jax.random.normal(jax.random.fold_in(key, 2), (2, 4, 16, 16),
                           dtype=jnp.float32).astype(jnp.bfloat16)
    y3 = jax.block_until_ready(layer(x3))
    y3_ref = _stable_softplus(x3.astype(jnp.float32)).astype(jnp.bfloat16)
    assert y3.dtype == jnp.bfloat16
    assert jnp.allclose(y3.astype(jnp.float32), y3_ref.astype(jnp.float32),
                        atol=4e-2, rtol=4e-2)

    print("KERNEL_OK")
</pallas_src>

<mosaic_0001>
module attributes {stable_mosaic.version = 11 : i64} {
  func.func @_lambda_kernel(%arg0: i32, %arg1: memref<8x256xf32, #tpu.memory_space<vmem>>, %arg2: memref<8x256xf32, #tpu.memory_space<vmem>>) attributes {dimension_semantics = [#tpu.dimension_semantics<parallel>], iteration_bounds = array<i64: 1>, scalar_prefetch = 0 : i64, scratch_operands = 0 : i64, tpu.core_type = #tpu.core_type<tc>, window_params = [{transform_indices = @transform_0, window_bounds = array<i64: 8, 256>}, {transform_indices = @transform_1, window_bounds = array<i64: 8, 256>}]} {
    %c0 = arith.constant 0 : index
    %c0_0 = arith.constant 0 : index
    %0 = vector.load %arg1[%c0, %c0_0] : memref<8x256xf32, #tpu.memory_space<vmem>>, vector<8x256xf32>
    %cst = arith.constant 0.000000e+00 : f32
    %1 = vector.broadcast %cst : f32 to vector<8x256xf32>
    %2 = arith.maximumf %0, %1 : vector<8x256xf32>
    %3 = math.absf %0 : vector<8x256xf32>
    %cst_1 = arith.constant 0.000000e+00 : f32
    %4 = vector.broadcast %cst_1 : f32 to vector<8x256xf32>
    %5 = arith.subf %4, %3 : vector<8x256xf32>
    %6 = math.exp %5 : vector<8x256xf32>
    %7 = math.log1p %6 : vector<8x256xf32>
    %8 = arith.addf %2, %7 : vector<8x256xf32>
    %c0_2 = arith.constant 0 : index
    %c0_3 = arith.constant 0 : index
    %9 = vector.load %arg2[%c0_2, %c0_3] : memref<8x256xf32, #tpu.memory_space<vmem>>, vector<8x256xf32>
    tpu.vector_store %arg2[%c0_2, %c0_3], %8 {strides = array<i32>} : memref<8x256xf32, #tpu.memory_space<vmem>>, vector<8x256xf32>,
    return
  }
  func.func @transform_0(%arg0: i32) -> (i32, i32) {
    %c0_i32 = arith.constant 0 : i32
    %c0_i32_0 = arith.constant 0 : i32
    return %arg0, %c0_i32 : i32, i32
  }
  func.func @transform_1(%arg0: i32) -> (i32, i32) {
    %c0_i32 = arith.constant 0 : i32
    %c0_i32_0 = arith.constant 0 : i32
    return %arg0, %c0_i32 : i32, i32
  }
}

</mosaic_0001>

<bundles_post_ra>
// kernel: tpu_custom_call.1
= control target key start
LH: loop header
LB: loop body
LE: loop exit
PB: predicated region body
PF: predicated region fallthrough
CT: control target
= control target key end

     0   :  { %6 = vsyncpa [#allocation3], 0  ;;  %s164_s0 = inlined_call_operand.hbm [shape: f32[8,256], index: 0, kind: input, shape index: {}]   ;;  %s165_s1 = inlined_call_operand.hbm [shape: f32[8,256], index: 1, kind: output, shape index: {}]  }
   0x1   :  { %7 = vsyncpa [#allocation4], 0  ;;  %s128_s6 = smov [#allocation2]   ;;  %s80_s10 = scalar_lea.hbm %s164_s0, 256 }
   0x2   :  { %s14_s7 = sshll.u32 %s128_s6, 4  ;;  %p81_p0 = scmp.ne.s32.totalorder %s164_s0, %s80_s10  ;;  %s15_s7 = int_to_ptr.vmem [resolvable:$true] %s14_s7 }
   0x3   :  { %p84_p1 = scmp.lt.u32.totalorder %s80_s10, %s164_s0 }
   0x5   :  { %p86_p2 = pnand %p84_p1, %p81_p0 }
   0x7   :  { %89 = shalt.err (!%p86_p2)
}
   0x8   :  { %s90_s15 = scalar_lea.vmem %s15_s7, 256  ;;  %p95_p4 = scmp.lt.s32.totalorder %s15_s7, %s15_s7 }
   0x9   :  { %p91_p3 = scmp.ne.s32.totalorder %s15_s7, %s90_s15  ;;  %p96_p5 = scmp.lt.s32.totalorder %s90_s15, %s90_s15 }
   0xb   :  { %p97_p6 = por %p96_p5, %p95_p4 }
   0xd   :  { %p98_p7 = pnand %p97_p6, %p91_p3 }
   0xf   :  { %101 = shalt.err (!%p98_p7)
}
  0x10   :  { %17 = dma.hbm_to_vmem [thread:$0]  %s164_s0, 256, %s15_s7, [#allocation3]  }
  0x11   :  { %124 = dma.done.wait [#allocation3], 256  }
  0x12   :  { %125 = vsyncadd [#allocation3], 4294967040  ;;  %v21_v0 = vld [vmem:[#allocation2] sm:$0xff]  ;;  %v22_v1 = vld [vmem:[#allocation2 + $0x8] sm:$0xff]  ;;  %s129_s0 = smov [#allocation5]  }
  0x13   :  { %v25_v2 = vand.u32 2147483647, %v21_v0  ;;  %v26_v3 = vand.u32 2147483647, %v22_v1  ;;  %v23_v20 = vmax.f32 %v21_v0, 0.0  ;;  %v24_v24 = vmax.f32 %v22_v1, 0.0 }
  0x14   :  { %s61_s18 = sshll.u32 %s129_s0, 4  ;;  %s62_s18 = int_to_ptr.vmem [resolvable:$true] %s61_s18 }
  0x15   :  { %v27_v4 = vsub.f32 0.0, %v25_v2  ;;  %v28_v5 = vsub.f32 0.0, %v26_v3  ;;  %s102_s19 = scalar_lea.vmem %s62_s18, 256  ;;  %p107_p9 = scmp.lt.s32.totalorder %s62_s18, %s62_s18 }
  0x16   :  { %p103_p8 = scmp.ne.s32.totalorder %s62_s18, %s102_s19  ;;  %p108_p10 = scmp.lt.s32.totalorder %s102_s19, %s102_s19 }
  0x17   :  { %v29_v6 = vmul.f32 1.442695, %v27_v4  ;;  %v31_v7 = vmul.f32 1.442695, %v28_v5 }
  0x18   :  { %p109_p11 = por %p108_p10, %p107_p9 }
  0x19   :  { %72 = vpow2.f32 %v29_v6 }
  0x1a   :  { %74 = vpow2.f32 %v31_v7  ;;  %p110_p12 = pnand %p109_p11, %p103_p8 }
  0x23   :  { %v73_v8 = vpop.eup %72 }
  0x24   :  { %v75_v9 = vpop.eup %74  ;;  %v33_v10 = vadd.f32 1.0, %v73_v8  ;;  %v36_v12 = vmul.f32 -0.5, %v73_v8  ;;  %v39_v15 = vand.u32 2147483647, %v73_v8 }
  0x25   :  { %v42_v11 = vadd.f32 1.0, %v75_v9  ;;  %v45_v13 = vmul.f32 -0.5, %v75_v9  ;;  %v48_v17 = vand.u32 2147483647, %v75_v9 }
  0x26   :  { %76 = vlog2.f32 %v33_v10  ;;  %v37_v14 = vadd.f32 1.0, %v36_v12  ;;  %vm40_vm0 = vcmp.lt.f32.partialorder %v39_v15, 0.0004427343 }
  0x27   :  { %78 = vlog2.f32 %v42_v11  ;;  %v46_v16 = vadd.f32 1.0, %v45_v13  ;;  %vm49_vm1 = vcmp.lt.f32.partialorder %v48_v17, 0.0004427343 }
  0x28   :  { %v38_v18 = vmul.f32 %v73_v8, %v37_v14 }
  0x29   :  { %v47_v21 = vmul.f32 %v75_v9, %v46_v16 }
  0x30   :  { %v77_v19 = vpop.eup %76 }
  0x31   :  { %v79_v22 = vpop.eup %78  ;;  %v35_v23 = vmul.f32 0.6931472, %v77_v19 }
  0x32   :  { %v44_v25 = vmul.f32 0.6931472, %v79_v22 }
  0x33   :  { %v41_v26 = vsel %vm40_vm0, %v38_v18, %v35_v23 }
  0x34   :  { %v51_v27 = vadd.f32 %v41_v26, %v23_v20  ;;  %v50_v28 = vsel %vm49_vm1, %v47_v21, %v44_v25 }
  0x35   :  { %v52_v29 = vadd.f32 %v50_v28, %v24_v24 }
  0x36   :  { %53 = vst [vmem:[#allocation5] sm:$0xff] %v51_v27 }
  0x37   :  { %54 = vst [vmem:[#allocation5 + $0x8] sm:$0xff] %v52_v29 }
  0x38   :  { %113 = shalt.err (!%p110_p12)
}
  0x39   :  { %s114_s22 = scalar_lea.hbm %s165_s1, 256 }
  0x3a   :  { %p115_p13 = scmp.ne.s32.totalorder %s165_s1, %s114_s22  ;;  %p118_p0 = scmp.lt.u32.totalorder %s114_s22, %s165_s1 }
  0x3c   :  { %p120_p1 = pnand %p118_p0, %p115_p13 }
  0x3e   :  { %123 = shalt.err (!%p120_p1)
}
  0x3f   :  { %64 = dma.vmem_to_hbm [thread:$0]  %s62_s18, 256, %s165_s1, [#allocation4]  }
  0x40   :  { %126 = dma.done.wait [#allocation4], 256  }
  0x41   :  { %127 = vsyncadd [#allocation4], 4294967040 }
  0x42   :  { %68 = vsyncpa [#allocation3], 1 }
  0x43   :  { %69 = vsyncpa [#allocation4], 1 }

</bundles_post_ra>
